<compile_context>
chip_gen: v7x
topology: tpu7x:2x2x1
jax: 0.10.0
libtpu: 0.0.40
codegen_flags: <defaults>
</compile_context>

<pallas_src>
import functools

import jax
import jax.numpy as jnp
from jax.experimental import pallas as pl
from jax.experimental.pallas import tpu as pltpu


def _round_up(v: int, m: int) -> int:
    return ((v + m - 1) // m) * m


def _hyperbolic_kernel(pi_yT_ref, py2_ref, invy_ref, x_ref, out_ref):
    """Produce one (TILE_N, TILE_L) tile of scores.

    pi_yT_ref : (D, TILE_L) f32  Poincare-projected labels, pre-transposed.
    py2_ref   : (1, TILE_L) f32  ||pi_y||^2 per label.
    invy_ref  : (1, TILE_L) f32  1 / (1 - ||pi_y||^2) per label.
    x_ref     : (TILE_N, D)      raw input rows.
    out_ref   : (TILE_N, TILE_L) f32 scores.
    """
    x = x_ref[...].astype(jnp.float32)

    # --- Poincare-ball projection of the x rows (per-row reciprocal) --------
    x_sq = jnp.sum(x * x, axis=-1, keepdims=True)                   # (TN, 1)
    inv_proj = pl.reciprocal(1.0 + jnp.sqrt(1.0 + x_sq), approx=False)
    pi_x = x * inv_proj                                             # (TN, D)

    px2 = jnp.sum(pi_x * pi_x, axis=-1, keepdims=True)              # (TN, 1)
    inv_x = pl.reciprocal(1.0 - px2, approx=False)                  # (TN, 1)

    pi_yT = pi_yT_ref[...]                                          # (D, TL)
    py2 = py2_ref[...]                                              # (1, TL)
    inv_y = invy_ref[...]                                           # (1, TL)

    # --- pairwise squared distance via MXU matmul ----------------------------
    # ||pi_y - pi_x||^2 = ||pi_x||^2 + ||pi_y||^2 - 2 <pi_x, pi_y>
    cross = jnp.dot(pi_x, pi_yT, preferred_element_type=jnp.float32)  # (TN, TL)
    d2 = px2 + py2 - 2.0 * cross

    # t = d - 1 = 2*d2 / ((1-||pi_x||^2)(1-||pi_y||^2)); per-vector reciprocals
    # replace the full-tile divide.  (The +1e-13 epsilon of the torch code is
    # dropped: both factors are strictly positive after the projection and the
    # epsilon is below f32 resolution for these denominators.)
    t = (2.0 * d2) * inv_x * inv_y
    # torch.where(d > 1+1e-6, d, 1+1e-6)  ==  clamp t at 1e-6.
    t = jnp.maximum(t, jnp.float32(1e-6))

    # arccosh(1 + t) = log(1 + t + sqrt(t*(t+2))) -- t kept exact, no (d-1)
    # cancellation; the clamp keeps the log argument >= 1 + ~2.4e-3.
    out_ref[...] = -jnp.log(1.0 + t + jnp.sqrt(t * (t + 2.0)))


@functools.partial(jax.jit, static_argnames=("tile_n", "tile_l"))
def hyperbolic_implication_scores(y: jax.Array, x: jax.Array,
                                  *, tile_n=None, tile_l=None) -> jax.Array:
    """y: (L, D); x: (batch, *, D).  Returns scores (batch, *, L)."""
    L, D = y.shape
    lead_shape = x.shape[:-1]
    x2d = x.reshape(-1, D).astype(jnp.float32)
    N = x2d.shape[0]

    # ---- y-side precompute: tiny (L x D), done once outside the grid --------
    y32 = y.astype(jnp.float32)
    y_sq = jnp.sum(y32 * y32, axis=-1, keepdims=True)
    pi_y = y32 / (1.0 + jnp.sqrt(1.0 + y_sq))            # (L, D)
    py2 = jnp.sum(pi_y * pi_y, axis=-1)                  # (L,)
    inv_y = 1.0 / (1.0 - py2)                            # (L,)

    # ---- tile sizes (lane-dense L, sublane-aligned N) ------------------------
    if tile_l is None:
        tile_l = min(1024, _round_up(L, 128))
    tile_l = _round_up(tile_l, 128)
    if tile_n is None:
        tile_n = min(512, _round_up(N, 8))
    tile_n = _round_up(tile_n, 8)

    L_pad = _round_up(L, tile_l)
    N_pad = _round_up(N, tile_n)

    # Zero padding is benign: padded x rows / y columns yield finite scores
    # that are sliced away below.
    pi_yT = jnp.pad(pi_y.T, ((0, 0), (0, L_pad - L)))            # (D, L_pad)
    py2_p = jnp.pad(py2[None, :], ((0, 0), (0, L_pad - L)))      # (1, L_pad)
    invy_p = jnp.pad(inv_y[None, :], ((0, 0), (0, L_pad - L)))   # (1, L_pad)
    x_p = jnp.pad(x2d, ((0, N_pad - N), (0, 0)))                 # (N_pad, D)

    grid = (pl.cdiv(N_pad, tile_n), pl.cdiv(L_pad, tile_l))

    # VMEM budget: double-buffered blocks + headroom, capped for v7x (64 MiB).
    vmem_bytes = 2 * 4 * (tile_n * D + tile_n * tile_l + D * tile_l + 2 * tile_l)
    vmem_limit = int(min(max(2 * vmem_bytes, 8 * 2**20), 64 * 2**20))

    scores = pl.pallas_call(
        _hyperbolic_kernel,
        out_shape=jax.ShapeDtypeStruct((N_pad, L_pad), jnp.float32),
        grid=grid,
        in_specs=[
            pl.BlockSpec((D, tile_l), lambda i, j: (0, j)),      # pi_y^T
            pl.BlockSpec((1, tile_l), lambda i, j: (0, j)),      # ||pi_y||^2
            pl.BlockSpec((1, tile_l), lambda i, j: (0, j)),      # 1/(1-||pi_y||^2)
            pl.BlockSpec((tile_n, D), lambda i, j: (i, 0)),      # x rows
        ],
        out_specs=pl.BlockSpec((tile_n, tile_l), lambda i, j: (i, j)),
        compiler_params=pltpu.CompilerParams(
            dimension_semantics=("parallel", "parallel"),
            vmem_limit_bytes=vmem_limit,
        ),
    )(pi_yT, py2_p, invy_p, x_p)

    return scores[:N, :L].reshape(*lead_shape, L)


def _reference(y, x):
    # Pure-JAX reference mirroring the PyTorch module literally.
    y = y.astype(jnp.float32)
    x = x.astype(jnp.float32)
    y_den = 1.0 + jnp.sqrt(1.0 + jnp.linalg.norm(y, axis=-1) ** 2)
    pi_y = y / y_den[..., None]
    x_den = 1.0 + jnp.sqrt(1.0 + jnp.linalg.norm(x, axis=-1) ** 2)
    pi_x = x / x_den[..., None]

    x2d = pi_x.reshape(-1, x.shape[-1])
    diff = pi_y[None, :, :] - x2d[:, None, :]
    d = jnp.linalg.norm(diff, axis=-1) ** 2
    den = (1.0 - jnp.linalg.norm(x2d, axis=-1) ** 2)[:, None] * \
          (1.0 - jnp.linalg.norm(pi_y, axis=-1) ** 2)[None, :] + 1e-13
    d = 1.0 + 2.0 * d / den
    d = jnp.where(d > 1.0 + 1e-6, d, jnp.ones_like(d) + 1e-6)
    return (-jnp.arccosh(d)).reshape(*x.shape[:-1], y.shape[0])


if __name__ == "__main__":
    key = jax.random.PRNGKey(0)
    ky, kx = jax.random.split(key)

    num_labels, hidden = 16, 32
    batch, seq = 2, 8

    y = jax.random.normal(ky, (num_labels, hidden), dtype=jnp.float32) * 0.5
    x = jax.random.normal(kx, (batch, seq, hidden), dtype=jnp.float32) * 0.5

    # tile_n=8 at these tiny shapes just to exercise a multi-step pipelined grid;
    # production shapes use the default (tile_n up to 512, tile_l up to 1024).
    out = hyperbolic_implication_scores(y, x, tile_n=8)
    jax.block_until_ready(out)

    ref = _reference(y, x)
    assert out.shape == (batch, seq, num_labels)
    assert jnp.allclose(out, ref, atol=1e-4, rtol=1e-4), "mismatch vs reference"

    print("KERNEL_OK")
</pallas_src>

<mosaic_0001>
module attributes {stable_mosaic.version = 11 : i64} {
  func.func @_hyperbolic_kernel(%arg0: i32, %arg1: i32, %arg2: memref<32x128xf32, #tpu.memory_space<vmem>>, %arg3: memref<1x128xf32, #tpu.memory_space<vmem>>, %arg4: memref<1x128xf32, #tpu.memory_space<vmem>>, %arg5: memref<8x32xf32, #tpu.memory_space<vmem>>, %arg6: memref<8x128xf32, #tpu.memory_space<vmem>>) attributes {dimension_semantics = [#tpu.dimension_semantics<parallel>, #tpu.dimension_semantics<parallel>], iteration_bounds = array<i64: 2, 1>, scalar_prefetch = 0 : i64, scratch_operands = 0 : i64, tpu.core_type = #tpu.core_type<tc>, window_params = [{transform_indices = @transform_0, window_bounds = array<i64: 32, 128>}, {transform_indices = @transform_1, window_bounds = array<i64: 1, 128>}, {transform_indices = @transform_2, window_bounds = array<i64: 1, 128>}, {transform_indices = @transform_3, window_bounds = array<i64: 8, 32>}, {transform_indices = @transform_4, window_bounds = array<i64: 8, 128>}]} {
    %c0 = arith.constant 0 : index
    %c0_0 = arith.constant 0 : index
    %0 = vector.load %arg5[%c0, %c0_0] : memref<8x32xf32, #tpu.memory_space<vmem>>, vector<8x32xf32>
    %1 = arith.mulf %0, %0 : vector<8x32xf32>
    %cst = arith.constant dense<0.000000e+00> : vector<8xf32>
    %2 = vector.multi_reduction <add>, %1, %cst [1] : vector<8x32xf32> to vector<8xf32>
    %3 = vector.shape_cast %2 : vector<8xf32> to vector<8x1xf32>
    %cst_1 = arith.constant 1.000000e+00 : f32
    %4 = vector.broadcast %cst_1 : f32 to vector<8x1xf32>
    %5 = arith.addf %4, %3 : vector<8x1xf32>
    %6 = math.sqrt %5 : vector<8x1xf32>
    %cst_2 = arith.constant 1.000000e+00 : f32
    %7 = vector.broadcast %cst_2 : f32 to vector<8x1xf32>
    %8 = arith.addf %7, %6 : vector<8x1xf32>
    %9 = tpu.reciprocal %8 : vector<8x1xf32> -> vector<8x1xf32>
    %10 = vector.broadcast %9 : vector<8x1xf32> to vector<8x32xf32>
    %11 = arith.mulf %0, %10 : vector<8x32xf32>
    %12 = arith.mulf %11, %11 : vector<8x32xf32>
    %cst_3 = arith.constant dense<0.000000e+00> : vector<8xf32>
    %13 = vector.multi_reduction <add>, %12, %cst_3 [1] : vector<8x32xf32> to vector<8xf32>
    %14 = vector.shape_cast %13 : vector<8xf32> to vector<8x1xf32>
    %cst_4 = arith.constant 1.000000e+00 : f32
    %15 = vector.broadcast %cst_4 : f32 to vector<8x1xf32>
    %16 = arith.subf %15, %14 : vector<8x1xf32>
    %17 = tpu.reciprocal %16 : vector<8x1xf32> -> vector<8x1xf32>
    %c0_5 = arith.constant 0 : index
    %c0_6 = arith.constant 0 : index
    %18 = vector.load %arg2[%c0_5, %c0_6] : memref<32x128xf32, #tpu.memory_space<vmem>>, vector<32x128xf32>
    %c0_7 = arith.constant 0 : index
    %c0_8 = arith.constant 0 : index
    %19 = vector.load %arg3[%c0_7, %c0_8] : memref<1x128xf32, #tpu.memory_space<vmem>>, vector<1x128xf32>
    %c0_9 = arith.constant 0 : index
    %c0_10 = arith.constant 0 : index
    %20 = vector.load %arg4[%c0_9, %c0_10] : memref<1x128xf32, #tpu.memory_space<vmem>>, vector<1x128xf32>
    %cst_11 = arith.constant dense<0.000000e+00> : vector<8x128xf32>
    %21 = tpu.matmul %11, %18, %cst_11 {dimension_numbers = #tpu.dot_dimension_numbers<[1], [0], [0], [1], [0, 0, 1, 1], [], []>} : vector<8x32xf32>, vector<32x128xf32>, vector<8x128xf32> -> vector<8x128xf32>
    %22 = vector.broadcast %14 : vector<8x1xf32> to vector<8x128xf32>
    %23 = vector.broadcast %19 : vector<1x128xf32> to vector<8x128xf32>
    %24 = arith.addf %22, %23 : vector<8x128xf32>
    %cst_12 = arith.constant 2.000000e+00 : f32
    %25 = vector.broadcast %cst_12 : f32 to vector<8x128xf32>
    %26 = arith.mulf %25, %21 : vector<8x128xf32>
    %27 = arith.subf %24, %26 : vector<8x128xf32>
    %cst_13 = arith.constant 2.000000e+00 : f32
    %28 = vector.broadcast %cst_13 : f32 to vector<8x128xf32>
    %29 = arith.mulf %28, %27 : vector<8x128xf32>
    %30 = vector.broadcast %17 : vector<8x1xf32> to vector<8x128xf32>
    %31 = arith.mulf %29, %30 : vector<8x128xf32>
    %32 = vector.broadcast %20 : vector<1x128xf32> to vector<8x128xf32>
    %33 = arith.mulf %31, %32 : vector<8x128xf32>
    %cst_14 = arith.constant 9.99999997E-7 : f32
    %34 = vector.broadcast %cst_14 : f32 to vector<8x128xf32>
    %35 = arith.maximumf %33, %34 : vector<8x128xf32>
    %cst_15 = arith.constant 1.000000e+00 : f32
    %36 = vector.broadcast %cst_15 : f32 to vector<8x128xf32>
    %37 = arith.addf %36, %35 : vector<8x128xf32>
    %cst_16 = arith.constant 2.000000e+00 : f32
    %38 = vector.broadcast %cst_16 : f32 to vector<8x128xf32>
    %39 = arith.addf %35, %38 : vector<8x128xf32>
    %40 = arith.mulf %35, %39 : vector<8x128xf32>
    %41 = math.sqrt %40 : vector<8x128xf32>
    %42 = arith.addf %37, %41 : vector<8x128xf32>
    %43 = math.log %42 : vector<8x128xf32>
    %cst_17 = arith.constant 0.000000e+00 : f32
    %44 = vector.broadcast %cst_17 : f32 to vector<8x128xf32>
    %45 = arith.subf %44, %43 : vector<8x128xf32>
    %c0_18 = arith.constant 0 : index
    %c0_19 = arith.constant 0 : index
    %46 = vector.load %arg6[%c0_18, %c0_19] : memref<8x128xf32, #tpu.memory_space<vmem>>, vector<8x128xf32>
    tpu.vector_store %arg6[%c0_18, %c0_19], %45 {strides = array<i32>} : memref<8x128xf32, #tpu.memory_space<vmem>>, vector<8x128xf32>,
    return
  }
  func.func @transform_0(%arg0: i32, %arg1: i32) -> (i32, i32) {
    %c0_i32 = arith.constant 0 : i32
    %c0_i32_0 = arith.constant 0 : i32
    return %c0_i32, %arg1 : i32, i32
  }
  func.func @transform_1(%arg0: i32, %arg1: i32) -> (i32, i32) {
    %c0_i32 = arith.constant 0 : i32
    %c0_i32_0 = arith.constant 0 : i32
    return %c0_i32, %arg1 : i32, i32
  }
  func.func @transform_2(%arg0: i32, %arg1: i32) -> (i32, i32) {
    %c0_i32 = arith.constant 0 : i32
    %c0_i32_0 = arith.constant 0 : i32
    return %c0_i32, %arg1 : i32, i32
  }
  func.func @transform_3(%arg0: i32, %arg1: i32) -> (i32, i32) {
    %c0_i32 = arith.constant 0 : i32
    %c0_i32_0 = arith.constant 0 : i32
    return %arg0, %c0_i32 : i32, i32
  }
  func.func @transform_4(%arg0: i32, %arg1: i32) -> (i32, i32) {
    %c0_i32 = arith.constant 0 : i32
    return %arg0, %arg1 : i32, i32
  }
}

</mosaic_0001>

<bundles_post_ra>
// kernel: hyperbolic_implication_scores.1
= control target key start
LH: loop header
LB: loop body
LE: loop exit
PB: predicated region body
PF: predicated region fallthrough
CT: control target
= control target key end

     0   :  { %s631_s15 = smov 0   ;;  %s633_s16 = smov 0   ;;  %s692_s0 = inlined_call_operand.vmem [shape: f32[32,128], index: 0, kind: input, shape index: {}]   ;;  %s693_s1 = inlined_call_operand.vmem [shape: f32[1,128], index: 1, kind: input, shape index: {}]   ;;  %s694_s2 = inlined_call_operand.vmem [shape: f32[1,128], index: 2, kind: input, shape index: {}]   ;;  %s695_s3 = inlined_call_operand.vmem [shape: f32[16,32], index: 3, kind: input, shape index: {}]   ;;  %s696_s4 = inlined_call_operand.vmem [shape: f32[16,128], index: 4, kind: output, shape index: {}]  }
   0x1   :  { %s635_s17 = smov 0  }
   0x2 LB: > { %s26_s18 = sadd.s32 1, %s597_s16  ;;  %p512_p0 = scmp.ge.s32.totalorder %s601_s17, 1  ;;  %s601_s17 = sphi %s635_s17, %s14_s17   ;;  %s597_s16 = sphi %s633_s16, %s698_s16   ;;  %s593_s15 = sphi %s631_s15, %s697_s15  }
   0x3   : > { %p28_p1 = scmp.ge.s32.totalorder %s26_s18, 2  ;;  %p200_p2 = scmp.lt.s32.totalorder %s601_s17, 3 }
   0x5   : > { %s700_s18 = smov (%p28_p1, %s26_s18), 0  ;;  %p201_p3 = pnand %p512_p0, %p200_p2 }
   0x6   : > { %p247_p4 = scmp.lt.s32.totalorder (!%p201_p3), %s593_s15, 1  ;;  %vm260_vm0 = vcmask (!%p201_p3), 261120   ;;  %v281_v3 = vld [vmem:[%s692_s0] sm:$0xff] (!%p201_p3)  ;;  %v282_v4 = vld [vmem:[%s692_s0 + $0x8] sm:$0xff] (!%p201_p3)  ;;  %v283_v5 = vld [vmem:[%s692_s0 + $0x10] sm:$0xff] (!%p201_p3)  ;;  %v603_v6 = vmov (!%p201_p3), 0.0|0.0  }
   0x7   : > { %204 = sbr.rel (%p201_p3) target bundleno = 456 (0x1c8), region = 36  ;;  %536 = vmatprep.subr.bf16.mxu0 (!%p201_p3), %v603_v6  ;;  %v537_v7 = vpack.c.bf16 (!%p201_p3), %v282_v4, %v281_v3  ;;  %v284_v8 = vld [vmem:[%s692_s0 + $0x18] sm:$0xff] (!%p201_p3)  ;;  %vm604_vm1 = vmmov (!%p201_p3), 0   ;;  %v605_v9 = vmov (!%p201_p3), 0.0   ;;  %v516_v25 = vld [vmem:[%s693_s1] ss:$0 sm:$0xff] (!%p201_p3) }
   0x8   : > { %533 = vmatprep.mubr.msk.f32.mxu0 (!%p201_p3), %vm604_vm1, %v605_v9  ;;  %v540_v10 = vpack.c.bf16 (!%p201_p3), %v284_v8, %v283_v5  ;;  %v517_v33 = vld [vmem:[%s694_s2] ss:$0 sm:$0xff] (!%p201_p3) }
   0x9   : > { %538 = vmatpush3.bf16.msra.mxu0 (!%p201_p3), %v537_v7 }
   0xa   : > { %539 = vmatprep.subr.bf16.mxu0 (!%p201_p3), %v603_v6 }
   0xd   : > { %541 = vmatpush3.bf16.msra.mxu0 (!%p201_p3), %v540_v10 }
   0xe   : > { %s702_s15 = smov (!%p247_p4, %s593_s15), 1 }
   0xf   : > { %s513_s19 = sshll.u32 %s702_s15, 3 }
  0x10   : > { %s250_s22 = scalar_lea.vmem %s695_s3, %s513_s19  ;;  %s257_s11 = scalar_lea.vmem %s696_s4, %s513_s19 }
  0x11   : > { %v258_v0 = vld [vmem:[%s250_s22] sm:$0xff] }
  0x12   : > { %v259_v1 = vmul.f32 %v258_v0, %v258_v0 }
  0x14   : > { %v261_v2 = vsel %vm260_vm0, %v259_v1, 0.0 }
  0x15   : > { %262 = vadd.xlane.f32.xlu0 %v261_v2 }
  0xa2   : > { %v263_v11 = vpop.xlane.xlu0 %262 }
  0xa3   : > { %v264_v12 = vadd.f32 1.0, %v263_v11 }
  0xa5   : > { %569 = vrsqrt.f32 %v264_v12  ;;  %vm267_vm2 = vcmp.eq.f32.partialorder %v264_v12, inf  ;;  %v270_v15 = vand.u32 2147483648, %v264_v12  ;;  %vm269_vm3 = vcmp.eq.f32.partialorder %v264_v12, 0.0 }
  0xaf   : > { %v570_v13 = vpop.eup %569 }
  0xb0   : > { %v266_v14 = vmul.f32 %v570_v13, %v264_v12 }
  0xb2   : > { %v268_v16 = vsel %vm267_vm2, %v264_v12, %v266_v14 }
  0xb3   : > { %v271_v17 = vsel %vm269_vm3, %v270_v15, %v268_v16 }
  0xb4   : > { %v272_v18 = vadd.f32 1.0, %v271_v17 }
  0xb6   : > { %571 = vrcp.f32 %v272_v18 }
  0xc0   : > { %v572_v19 = vpop.eup %571 }
  0xc1   : > { %v274_v20 = vmul.f32 %v572_v19, %v258_v0 }
  0xc3   : > { %534 = vmatmul.mubr.msk.f32.vlgmr.msra.gmra.mrb[0].mxu0 %vm260_vm0, %v274_v20  ;;  %v275_v21 = vmul.f32 %v274_v20, %v274_v20 }
  0xc5   : > { %v276_v22 = vsel %vm260_vm0, %v275_v21, 0.0 }
  0xc6   : > { %277 = vadd.xlane.f32.xlu0 %v276_v22 }
 0x153   : > { %v278_v23 = vpop.xlane.xlu0 %277 }
 0x154   : > { %v279_v24 = vsub.f32 1.0, %v278_v23  ;;  %v366_v27 = vadd.f32 %v516_v25, %v278_v23 }
 0x156   : > { %573 = vrcp.f32 %v279_v24 }
 0x160   : > { %v574_v32 = vpop.eup %573 }
 0x196   : > { %v356_v26 = vpop.f32.mrb[0].mxu0 }
 0x197   : > { %v367_v28 = vmul.f32 2.0, %v356_v26  ;;  %v535_v29 = vpop.f32.mrb[1].mxu0 }
 0x199   : > { %v368_v30 = vsub.f32 %v366_v27, %v367_v28 }
 0x19b   : > { %v369_v31 = vmul.f32 2.0, %v368_v30 }
 0x19d   : > { %v370_v34 = vmul.f32 %v574_v32, %v369_v31 }
 0x19f   : > { %v377_v35 = vmul.f32 %v517_v33, %v370_v34 }
 0x1a1   : > { %v378_v36 = vmax.f32 %v377_v35, 1e-06 }
 0x1a3   : > { %v380_v37 = vadd.f32 2.0, %v378_v36  ;;  %v379_v42 = vadd.f32 1.0, %v378_v36 }
 0x1a5   : > { %v381_v38 = vmul.f32 %v380_v37, %v378_v36 }
 0x1a7   : > { %575 = vrsqrt.f32 %v381_v38  ;;  %vm384_vm4 = vcmp.eq.f32.partialorder %v381_v38, inf  ;;  %v387_v41 = vand.u32 2147483648, %v381_v38  ;;  %vm386_vm5 = vcmp.eq.f32.partialorder %v381_v38, 0.0 }
 0x1b1   : > { %v576_v39 = vpop.eup %575 }
 0x1b2   : > { %v383_v40 = vmul.f32 %v576_v39, %v381_v38 }
 0x1b4   : > { %v385_v43 = vsel %vm384_vm4, %v381_v38, %v383_v40 }
 0x1b5   : > { %v388_v44 = vsel %vm386_vm5, %v387_v41, %v385_v43 }
 0x1b6   : > { %v389_v45 = vadd.f32 %v388_v44, %v379_v42 }
 0x1b8   : > { %577 = vlog2.f32 %v389_v45 }
 0x1c2   : > { %v578_v46 = vpop.eup %577 }
 0x1c3   : > { %v391_v47 = vmul.f32 0.6931472, %v578_v46 }
 0x1c5   : > { %v392_v48 = vsub.f32 0.0, %v391_v47 }
 0x1c7   : > { %393 = vst [vmem:[%s257_s11] sm:$0xff] %v392_v48 }
 0x1c8 PF: > { %s14_s17 = sadd.s32 1, %s601_s17   ;;  %s697_s15 = smov %s597_s16 }
 0x1c9   : > { %p11_p5 = scmp.ge.s32.totalorder %s14_s17, 4   ;;  %s698_s16 = smov %s700_s18 }
 0x1cb   :  { %13 = sbr.rel (!%p11_p5) target bundleno = 2 (0x2), region = 75 }

</bundles_post_ra>
